<compile_context>
chip_gen: v7x
topology: tpu7x:2x2x1
jax: 0.10.0
libtpu: 0.0.40
codegen_flags: <defaults>
</compile_context>

<pallas_src>
import math

import jax
import jax.numpy as jnp
from jax import lax
from jax.experimental import pallas as pl
from jax.experimental.pallas import tpu as pltpu


# --------------------------------------------------------------------------- #
# helpers                                                                      #
# --------------------------------------------------------------------------- #
def _pick_tile(n: int, target: int) -> int:
    """Largest tile <= target that divides n and is a multiple of 8, else n."""
    if n <= target:
        return n
    t = (target // 8) * 8
    while t >= 8:
        if n % t == 0:
            return t
        t -= 8
    return n


def _const_spec(block_shape, index_map):
    """BlockSpec for a block whose index_map never changes across the grid.

    Single-buffer it (reclaims the duplicate weight buffer -- cheapest VMEM win,
    most valuable on v7x's 64 MiB VMEM).  Falls back to the default
    double-buffered spec on jax versions without `pipeline_mode`.
    """
    try:
        return pl.BlockSpec(block_shape, index_map, pipeline_mode=pl.Buffered(1))
    except TypeError:
        return pl.BlockSpec(block_shape, index_map)


def _vmem_limit(*tile_bytes, headroom=2.0):
    est = int(sum(tile_bytes) * headroom)
    return max(16 * 1024 * 1024, min(64 * 1024 * 1024, est))


# --------------------------------------------------------------------------- #
# kernel 1: fused QKV projection (bf16 MXU GEMM, f32 accumulate)               #
# --------------------------------------------------------------------------- #
def _qkv_proj_kernel(x_ref, w_ref, b_ref, qkv_ref):
    # x_ref  : (Tm, H)  f32 row tile of flattened hidden_states
    # w_ref  : (H, 3H)  bf16 fused [Wq*scale | Wk | Wv]   (constant block)
    # b_ref  : (1, 3H)  f32  fused [bq*scale | bk | bv]   (constant block)
    # qkv_ref: (Tm, 3H) bf16 output tile
    x = x_ref[...].astype(jnp.bfloat16)                      # bf16 MXU operand
    acc = jnp.dot(x, w_ref[...],
                  preferred_element_type=jnp.float32)        # f32 accumulate
    qkv_ref[...] = (acc + b_ref[0]).astype(qkv_ref.dtype)


# --------------------------------------------------------------------------- #
# kernel 2: head-batched attention for one (batch, query-tile)                 #
# --------------------------------------------------------------------------- #
def _attn_kernel(q_ref, k_ref, v_ref, mask_ref, out_ref):
    # q_ref   : (heads, Tq, d) bf16   query tile (scale already folded in)
    # k_ref   : (heads, S,  d) bf16   full keys for this batch element
    # v_ref   : (heads, S,  d) bf16   full values for this batch element
    # mask_ref: (1, S)         f32    additive attention mask
    # out_ref : (heads, Tq, d) f32
    # scores[h, q, k] = sum_d q[h,q,d] * k[h,k,d]   (f32 accumulation on MXU)
    scores = lax.dot_general(
        q_ref[...], k_ref[...],
        dimension_numbers=(((2,), (2,)), ((0,), (0,))),
        preferred_element_type=jnp.float32)                  # (heads, Tq, S)

    scores = scores + mask_ref[0][None, None, :]             # additive mask

    # Numerically stable softmax along keys; exp kept in f32 (v5e-safe),
    # denominator reciprocal runs on the EUP slot.
    scores = scores - jnp.max(scores, axis=-1, keepdims=True)
    p = jnp.exp(scores)
    p = p * pl.reciprocal(jnp.sum(p, axis=-1, keepdims=True), approx=True)
    # TODO(synk): dropout(attention_probs) omitted (attention_probs_dropout_prob=0.0).

    # ctx[h, q, d] = sum_k p[h,q,k] * v[h,k,d]
    ctx = lax.dot_general(
        p.astype(jnp.bfloat16), v_ref[...],
        dimension_numbers=(((2,), (1,)), ((0,), (0,))),
        preferred_element_type=jnp.float32)                  # (heads, Tq, d)

    out_ref[...] = ctx.astype(out_ref.dtype)


# --------------------------------------------------------------------------- #
# wrapper                                                                      #
# --------------------------------------------------------------------------- #
def qbert_self_attention(hidden_states, wq, wk, wv, bq, bk, bv, attention_mask,
                         *, num_heads):
    """hidden_states (B,S,H) f32; wq/wk/wv (H,H) pre-transposed (y = x@W + b);
    bq/bk/bv (1,H); attention_mask (B,1,S) additive.  Returns (B,S,H) f32."""
    f32, bf16 = jnp.float32, jnp.bfloat16
    B, S, H = hidden_states.shape
    head_dim = H // num_heads
    rows = B * S
    scale = 1.0 / math.sqrt(head_dim)                        # attn_scale.scale

    # Fuse QKV params once; fold 1/sqrt(d) into the Q columns; pre-cast the
    # weight to bf16 (halves its VMEM tile and makes it a native MXU operand).
    wqkv = jnp.concatenate([wq * scale, wk, wv], axis=1).astype(bf16)  # (H, 3H)
    bqkv = jnp.concatenate([bq * scale, bk, bv], axis=1).astype(f32)   # (1, 3H)
    x2d = hidden_states.reshape(rows, H).astype(f32)

    # ---------------- fused QKV projection ---------------- #
    Tm = _pick_tile(rows, 256)
    vmem1 = _vmem_limit(
        2 * Tm * H * 4,            # x tile, f32, double-buffered
        H * 3 * H * 2,             # fused weight, bf16, single-buffered
        3 * H * 4,                 # fused bias
        2 * Tm * 3 * H * 2,        # qkv output tile, bf16, double-buffered
        Tm * 3 * H * 4,            # f32 accumulator / bf16 copies
    )
    qkv2d = pl.pallas_call(
        _qkv_proj_kernel,
        out_shape=jax.ShapeDtypeStruct((rows, 3 * H), bf16),
        grid_spec=pltpu.PrefetchScalarGridSpec(
            num_scalar_prefetch=0,
            grid=(rows // Tm,),
            in_specs=[
                pl.BlockSpec((Tm, H), lambda i: (i, 0)),
                _const_spec((H, 3 * H), lambda i: (0, 0)),
                _const_spec((1, 3 * H), lambda i: (0, 0)),
            ],
            out_specs=pl.BlockSpec((Tm, 3 * H), lambda i: (i, 0)),
        ),
        compiler_params=pltpu.CompilerParams(
            dimension_semantics=("parallel",),
            vmem_limit_bytes=vmem1),
    )(x2d, wqkv, bqkv)

    # transpose_for_scores as XLA layout plumbing (outside the kernel):
    # (rows, 3H) -> (B, S, 3, heads, d) -> (3, B, heads, S, d)
    qkv5 = jnp.transpose(qkv2d.reshape(B, S, 3, num_heads, head_dim),
                         (2, 0, 3, 1, 4))
    q_h, k_h, v_h = qkv5[0], qkv5[1], qkv5[2]                 # (B, heads, S, d) bf16

    # ---------------- attention, tiled over (batch, query tile) ------------ #
    Tq = _pick_tile(S, 128)
    d_pad = max(head_dim, 128)                                # lane padding of d
    vmem2 = _vmem_limit(
        2 * num_heads * Tq * d_pad * 2,        # q tile, bf16, double-buffered
        2 * 2 * num_heads * S * d_pad * 2,     # k + v blocks, bf16, double-buffered
        2 * S * 4,                             # mask
        2 * num_heads * Tq * d_pad * 4,        # output tile, f32, double-buffered
        3 * num_heads * Tq * S * 4,            # scores / probs intermediates
    )
    ctx = pl.pallas_call(
        _attn_kernel,
        out_shape=jax.ShapeDtypeStruct((B, num_heads, S, head_dim), f32),
        grid_spec=pltpu.PrefetchScalarGridSpec(
            num_scalar_prefetch=0,
            grid=(B, S // Tq),
            in_specs=[
                pl.BlockSpec((pl.Squeezed(), num_heads, Tq, head_dim),
                             lambda b, i: (b, 0, i, 0)),       # q tile
                pl.BlockSpec((pl.Squeezed(), num_heads, S, head_dim),
                             lambda b, i: (b, 0, 0, 0)),       # k (full sequence)
                pl.BlockSpec((pl.Squeezed(), num_heads, S, head_dim),
                             lambda b, i: (b, 0, 0, 0)),       # v (full sequence)
                pl.BlockSpec((pl.Squeezed(), 1, S),
                             lambda b, i: (b, 0, 0)),          # additive mask
            ],
            out_specs=pl.BlockSpec((pl.Squeezed(), num_heads, Tq, head_dim),
                                   lambda b, i: (b, 0, i, 0)),
        ),
        compiler_params=pltpu.CompilerParams(
            dimension_semantics=("parallel", "parallel"),
            vmem_limit_bytes=vmem2),
    )(q_h, k_h, v_h, attention_mask.astype(f32))               # (B, heads, S, d)

    # permute(0,2,1,3).contiguous().view(B, S, all_head_size) -- done in the
    # wrapper (can fuse into the following output projection in a full model).
    # For a bf16 model, make the kernel out_shape bf16 to halve writeback bytes.
    return jnp.transpose(ctx, (0, 2, 1, 3)).reshape(B, S, H)


# --------------------------------------------------------------------------- #
# pure-JAX reference (mirrors QBertSelfAttention.trainFunc)                    #
# --------------------------------------------------------------------------- #
def _reference(hidden_states, wq, wk, wv, bq, bk, bv, attention_mask, *, num_heads):
    B, S, H = hidden_states.shape
    d = H // num_heads
    q = hidden_states @ wq + bq
    k = hidden_states @ wk + bk
    v = hidden_states @ wv + bv

    def split(t):  # (B,S,H) -> (B,heads,S,d)
        return t.reshape(B, S, num_heads, d).transpose(0, 2, 1, 3)

    qh, kh, vh = split(q), split(k), split(v)
    scores = jnp.einsum('bhqd,bhkd->bhqk', qh, kh) / math.sqrt(d)
    scores = scores + attention_mask[:, None, :, :]            # (B,1,1,S) broadcast
    probs = jax.nn.softmax(scores, axis=-1)
    ctx = jnp.einsum('bhqk,bhkd->bhqd', probs, vh)
    return ctx.transpose(0, 2, 1, 3).reshape(B, S, H)


if __name__ == "__main__":
    # Small deterministic config: hidden=32, heads=4, head_dim=8, batch=2, seq=8.
    B, S, H, NH = 2, 8, 32, 4

    key = jax.random.PRNGKey(0)
    k0, k1, k2, k3, k4, k5, k6, _ = jax.random.split(key, 8)

    hidden_states = jax.random.normal(k0, (B, S, H), dtype=jnp.float32)
    wq = jax.random.normal(k1, (H, H), dtype=jnp.float32) * 0.05
    wk = jax.random.normal(k2, (H, H), dtype=jnp.float32) * 0.05
    wv = jax.random.normal(k3, (H, H), dtype=jnp.float32) * 0.05
    bq = jax.random.normal(k4, (1, H), dtype=jnp.float32) * 0.01
    bk = jax.random.normal(k5, (1, H), dtype=jnp.float32) * 0.01
    bv = jax.random.normal(k6, (1, H), dtype=jnp.float32) * 0.01
    # Additive attention mask: last two key positions masked out for batch 1.
    mask = jnp.zeros((B, 1, S), dtype=jnp.float32)
    mask = mask.at[1, 0, -2:].set(-1e9)

    out = qbert_self_attention(hidden_states, wq, wk, wv, bq, bk, bv, mask,
                               num_heads=NH)
    out = jax.block_until_ready(out)

    ref = _reference(hidden_states, wq, wk, wv, bq[0], bk[0], bv[0], mask,
                     num_heads=NH)

    assert out.shape == (B, S, H)
    # bf16 MXU operands (~2^-9 rel) + approx reciprocal (~2^-12 rel) vs f32 ref.
    assert jnp.allclose(out, ref, atol=2e-2, rtol=2e-2), "mismatch vs JAX reference"
    print("KERNEL_OK")
</pallas_src>

<mosaic_0001>
module attributes {stable_mosaic.version = 11 : i64} {
  func.func @_qkv_proj_kernel(%arg0: i32, %arg1: memref<16x32xf32, #tpu.memory_space<vmem>>, %arg2: memref<32x96xbf16, #tpu.memory_space<vmem>>, %arg3: memref<1x96xf32, #tpu.memory_space<vmem>>, %arg4: memref<16x96xbf16, #tpu.memory_space<vmem>>) attributes {dimension_semantics = [#tpu.dimension_semantics<parallel>], iteration_bounds = array<i64: 1>, scalar_prefetch = 0 : i64, scratch_operands = 0 : i64, tpu.core_type = #tpu.core_type<tc>, window_params = [{transform_indices = @transform_0, window_bounds = array<i64: 16, 32>}, {pipeline_mode = #tpu.pipeline_mode<synchronous>, transform_indices = @transform_1, window_bounds = array<i64: 32, 96>}, {pipeline_mode = #tpu.pipeline_mode<synchronous>, transform_indices = @transform_2, window_bounds = array<i64: 1, 96>}, {transform_indices = @transform_3, window_bounds = array<i64: 16, 96>}]} {
    %c0 = arith.constant 0 : index
    %c0_0 = arith.constant 0 : index
    %0 = vector.load %arg1[%c0, %c0_0] : memref<16x32xf32, #tpu.memory_space<vmem>>, vector<16x32xf32>
    %1 = arith.truncf %0 : vector<16x32xf32> to vector<16x32xbf16>
    %c0_1 = arith.constant 0 : index
    %c0_2 = arith.constant 0 : index
    %2 = vector.load %arg2[%c0_1, %c0_2] : memref<32x96xbf16, #tpu.memory_space<vmem>>, vector<32x96xbf16>
    %cst = arith.constant dense<0.000000e+00> : vector<16x96xf32>
    %3 = tpu.matmul %1, %2, %cst {dimension_numbers = #tpu.dot_dimension_numbers<[1], [0], [0], [1], [0, 0, 1, 1], [], []>} : vector<16x32xbf16>, vector<32x96xbf16>, vector<16x96xf32> -> vector<16x96xf32>
    %c0_3 = arith.constant 0 : index
    %c0_4 = arith.constant 0 : index
    %4 = vector.load %arg3[%c0_3, %c0_4] : memref<1x96xf32, #tpu.memory_space<vmem>>, vector<1x96xf32>
    %5 = vector.shape_cast %4 : vector<1x96xf32> to vector<96xf32>
    %6 = vector.shape_cast %5 : vector<96xf32> to vector<1x96xf32>
    %7 = vector.broadcast %6 : vector<1x96xf32> to vector<16x96xf32>
    %8 = arith.addf %3, %7 : vector<16x96xf32>
    %9 = arith.truncf %8 : vector<16x96xf32> to vector<16x96xbf16>
    %c0_5 = arith.constant 0 : index
    %c0_6 = arith.constant 0 : index
    %10 = vector.load %arg4[%c0_5, %c0_6] : memref<16x96xbf16, #tpu.memory_space<vmem>>, vector<16x96xbf16>
    tpu.vector_store %arg4[%c0_5, %c0_6], %9 {strides = array<i32>} : memref<16x96xbf16, #tpu.memory_space<vmem>>, vector<16x96xbf16>,
    return
  }
  func.func @transform_0(%arg0: i32) -> (i32, i32) {
    %c0_i32 = arith.constant 0 : i32
    %c0_i32_0 = arith.constant 0 : i32
    return %arg0, %c0_i32 : i32, i32
  }
  func.func @transform_1(%arg0: i32) -> (i32, i32) {
    %c0_i32 = arith.constant 0 : i32
    %c0_i32_0 = arith.constant 0 : i32
    %c0_i32_1 = arith.constant 0 : i32
    return %c0_i32, %c0_i32_0 : i32, i32
  }
  func.func @transform_2(%arg0: i32) -> (i32, i32) {
    %c0_i32 = arith.constant 0 : i32
    %c0_i32_0 = arith.constant 0 : i32
    %c0_i32_1 = arith.constant 0 : i32
    return %c0_i32, %c0_i32_0 : i32, i32
  }
  func.func @transform_3(%arg0: i32) -> (i32, i32) {
    %c0_i32 = arith.constant 0 : i32
    %c0_i32_0 = arith.constant 0 : i32
    return %arg0, %c0_i32 : i32, i32
  }
}

</mosaic_0001>

<bundles_post_ra>
// kernel: tpu_custom_call.1
= control target key start
LH: loop header
LB: loop body
LE: loop exit
PB: predicated region body
PF: predicated region fallthrough
CT: control target
= control target key end

     0   :  { %8 = vsyncpa [#allocation3], 0  ;;  %s320_s0 = inlined_call_operand.hbm [shape: f32[16,32], index: 0, kind: input, shape index: {}]   ;;  %s321_s1 = inlined_call_operand.hbm [shape: bf16[32,96], index: 1, kind: input, shape index: {}]   ;;  %s322_s2 = inlined_call_operand.vmem [shape: f32[1,96], index: 2, kind: input, shape index: {}]   ;;  %s323_s3 = inlined_call_operand.hbm [shape: bf16[16,96], index: 3, kind: output, shape index: {}]  }
   0x1   :  { %9 = vsyncpa [#allocation6], 0 }
   0x2   :  { %10 = vsyncpa [#allocation4], 0  ;;  %s246_s12 = smov [#allocation2]   ;;  %s174_s16 = scalar_lea.hbm %s320_s0, 256 }
   0x3   :  { %s16_s13 = sshll.u32 %s246_s12, 4  ;;  %p175_p0 = scmp.ne.s32.totalorder %s320_s0, %s174_s16  ;;  %s17_s13 = int_to_ptr.vmem [resolvable:$true] %s16_s13 }
   0x4   :  { %p178_p1 = scmp.lt.u32.totalorder %s174_s16, %s320_s0 }
   0x6   :  { %p180_p2 = pnand %p178_p1, %p175_p0 }
   0x8   :  { %183 = shalt.err (!%p180_p2)
}
   0x9   :  { %s184_s21 = scalar_lea.vmem %s17_s13, 256  ;;  %p189_p4 = scmp.lt.s32.totalorder %s17_s13, %s17_s13 }
   0xa   :  { %p185_p3 = scmp.ne.s32.totalorder %s17_s13, %s184_s21  ;;  %p190_p5 = scmp.lt.s32.totalorder %s184_s21, %s184_s21 }
   0xc   :  { %p191_p6 = por %p190_p5, %p189_p4 }
   0xe   :  { %p192_p7 = pnand %p191_p6, %p185_p3 }
  0x10   :  { %195 = shalt.err (!%p192_p7)
}
  0x11   :  { %s247_s22 = smov 128   ;;  %s248_s23 = smov 8  }
  0x12   :  { %22 = dma.hbm_to_vmem [thread:$0]  %s320_s0, 256, %s17_s13, [#allocation3], %s247_s22, %s247_s22, %s248_s23  }
  0x13   :  { %s249_s26 = smov [#allocation5]   ;;  %s196_s30 = scalar_lea.hbm %s321_s1, 256 }
  0x14   :  { %s28_s27 = sshll.u32 %s249_s26, 4  ;;  %p197_p8 = scmp.ne.s32.totalorder %s321_s1, %s196_s30  ;;  %s29_s27 = int_to_ptr.vmem [resolvable:$true] %s28_s27 }
  0x15   :  { %p200_p9 = scmp.lt.u32.totalorder %s196_s30, %s321_s1 }
  0x17   :  { %p202_p10 = pnand %p200_p9, %p197_p8 }
  0x19   :  { %205 = shalt.err (!%p202_p10)
}
  0x1a   :  { %s206_s8 = scalar_lea.vmem %s29_s27, 256  ;;  %p211_p12 = scmp.lt.s32.totalorder %s29_s27, %s29_s27 }
  0x1b   :  { %p207_p11 = scmp.ne.s32.totalorder %s29_s27, %s206_s8  ;;  %p212_p13 = scmp.lt.s32.totalorder %s206_s8, %s206_s8 }
  0x1d   :  { %p213_p0 = por %p212_p13, %p211_p12 }
  0x1f   :  { %p214_p1 = pnand %p213_p0, %p207_p11 }
  0x21   :  { %217 = shalt.err (!%p214_p1)
}
  0x22   :  { %s250_s0 = smov 64   ;;  %s251_s9 = smov 4  }
  0x23   :  { %34 = dma.hbm_to_vmem [thread:$0]  %s321_s1, 256, %s29_s27, [#allocation6], %s250_s0, %s250_s0, %s251_s9  }
  0x24   :  { %240 = dma.done.wait [#allocation3], 256  }
  0x25   :  { %241 = vsyncadd [#allocation3], 4294967040 }
  0x26   :  { %242 = dma.done.wait [#allocation6], 256  }
  0x27   :  { %243 = vsyncadd [#allocation6], 4294967040  ;;  %v252_v0 = vmov 0.0   ;;  %vm253_vm0 = vmmov 0   ;;  %v172_v1 = vld [vmem:[#allocation5] sm:$0xff]   ;;  %v173_v2 = vld [vmem:[#allocation5 + $0x8] sm:$0xff]  }
  0x28   :  { %155 = vmatprep.subr.bf16.mxu0 %v252_v0  ;;  %159 = vmatprep.mubr.msk.bf16.mxu0 %vm253_vm0, %v252_v0  ;;  %v44_v3 = vld [vmem:[#allocation2] sm:$0xff]  ;;  %v45_v4 = vld [vmem:[#allocation2 + $0x8] sm:$0xff]  ;;  %vm70_vm1 = vcmask 261120   ;;  %vm123_vm2 = vcmask 781312   ;;  %s254_s13 = smov [#allocation7]  }
  0x29   :  { %156 = vmatpush3.bf16.msra.mxu0 %v172_v1  ;;  %v46_v5 = vpack.c.bf16 %v45_v4, %v44_v3  ;;  %v144_v6 = vld [vmem:[%s322_s2] ss:$0 sm:$0xff]  ;;  %s131_s14 = sshll.u32 %s254_s13, 4  ;;  %s132_s14 = int_to_ptr.vmem [resolvable:$true] %s131_s14 }
  0x2a   :  { %157 = vmatprep.subr.bf16.mxu0 %v252_v0  ;;  %s218_s15 = scalar_lea.vmem %s132_s14, 128  ;;  %p223_p3 = scmp.lt.s32.totalorder %s132_s14, %s132_s14 }
  0x2b   :  { %p219_p2 = scmp.ne.s32.totalorder %s132_s14, %s218_s15  ;;  %p224_p4 = scmp.lt.s32.totalorder %s218_s15, %s218_s15 }
  0x2d   :  { %158 = vmatpush3.bf16.msra.mxu0 %v173_v2  ;;  %p225_p5 = por %p224_p4, %p223_p3 }
  0x2f   :  { %p226_p6 = pnand %p225_p5, %p219_p2 }
  0x30   :  { %160 = vmatmul.mubr.msk.bf16.vlgmr.msra.gmra.mrb[0].mxu0 %vm70_vm1, %v46_v5 }
 0x103   :  { %v108_v7 = vpop.f32.mrb[0].mxu0 }
 0x104   :  { %v109_v8 = vadd.f32 %v144_v6, %v108_v7  ;;  %v161_v9 = vpop.f32.mrb[1].mxu0 }
 0x105   :  { %v111_v10 = vpop.f32.mrb[2].mxu0 }
 0x106   :  { %v150_v11 = vpack.c.bf16 %v109_v8, %v109_v8  ;;  %v112_v12 = vadd.f32 %v144_v6, %v111_v10  ;;  %v162_v13 = vpop.f32.mrb[3].mxu0 }
 0x108   :  { %v151_v14 = vpack.c.bf16 %v112_v12, %v112_v12  ;;  %124 = vst.msk [vmem:[#allocation7] sm:$0xf] %vm123_vm2, %v150_v11 }
 0x10a   :  { %125 = vst.msk [vmem:[#allocation7 + $0x4] sm:$0xf] %vm123_vm2, %v151_v14 }
 0x10b   :  { %229 = shalt.err (!%p226_p6)
}
 0x10c   :  { %s230_s17 = scalar_lea.hbm %s323_s3, 128 }
 0x10d   :  { %p231_p7 = scmp.ne.s32.totalorder %s323_s3, %s230_s17  ;;  %p234_p8 = scmp.lt.u32.totalorder %s230_s17, %s323_s3 }
 0x10f   :  { %p236_p9 = pnand %p234_p8, %p231_p7 }
 0x111   :  { %239 = shalt.err (!%p236_p9)
}
 0x112   :  { %137 = dma.vmem_to_hbm [thread:$0]  %s132_s14, 128, %s323_s3, [#allocation4], %s250_s0, %s250_s0, %s251_s9  }
 0x113   :  { %244 = dma.done.wait [#allocation4], 128  }
 0x114   :  { %245 = vsyncadd [#allocation4], 4294967168 }
 0x115   :  { %141 = vsyncpa [#allocation3], 1 }
 0x116   :  { %142 = vsyncpa [#allocation6], 1 }
 0x117   :  { %143 = vsyncpa [#allocation4], 1 }

</bundles_post_ra>
